<compile_context>
chip_gen: v7x
topology: tpu7x:2x2x1
jax: 0.10.0
libtpu: 0.0.40
codegen_flags: <defaults>
</compile_context>

<pallas_src>
import jax
import jax.numpy as jnp
from jax.experimental import pallas as pl
from jax.experimental.pallas import tpu as pltpu


def _make_kernel(bn, c_in, has_prev, has_goal, use_vpu, mxu_dtype):
    def kernel(*refs):
        i = 0
        x_ref = refs[i]; i += 1          # (bn, C_in, T) observation tile (native dtype)
        wt_ref = refs[i]; i += 1         # (D, C_in)     1x1-conv weight^T (resident)
        b_ref = refs[i]; i += 1          # (D, 1)        bias (resident)
        prev_ref = None
        goal_ref = None
        if has_prev:
            prev_ref = refs[i]; i += 1   # (bn, D, T)    previous state tile
        if has_goal:
            goal_ref = refs[i]; i += 1   # (bn, D, 1)    per-batch goal embedding
        out_ref = refs[i]                # (bn, D, T)    new state tile

        bias = b_ref[...].astype(jnp.float32)                       # (D, 1)
        # Hoist the (tiny, loop-invariant) weight cast out of the batch loop.
        wt = wt_ref[...].astype(jnp.float32 if use_vpu else mxu_dtype)

        for bi in range(bn):             # static, unrolled
            # Fuse bias + goal into one (D,1) additive term.
            add = bias
            if has_goal:
                add = add + goal_ref[bi].astype(jnp.float32)

            if use_vpu:
                # Tiny contraction dim: unrolled VPU broadcast multiply-add
                # keeps the bandwidth-bound kernel off the MXU entirely.
                # The fused (bias+goal) term is folded into MAC term 0.
                x = x_ref[bi].astype(jnp.float32)                   # (C_in, T)
                h = wt[:, 0:1] * x[0:1, :] + add                    # (D, T)
                for c in range(1, c_in):
                    h = h + wt[:, c:c + 1] * x[c:c + 1, :]
            else:
                x = x_ref[bi].astype(mxu_dtype)
                h = jnp.dot(wt, x, preferred_element_type=jnp.float32)
                h = h + add

            if has_prev:
                h = h + prev_ref[bi].astype(jnp.float32)
            out_ref[bi] = jnp.maximum(h, 0.0).astype(out_ref.dtype)

    return kernel


def _vmem_budget_and_limit():
    """Generation-aware VMEM budget for the double-buffered HBM streams."""
    phys = None
    try:
        phys = int(pltpu.get_tpu_info().vmem_capacity_bytes)
    except Exception:
        phys = None
    if phys is None:
        phys = 64 << 20                    # assume smallest (v7x per-TC) if unknown
    if phys >= (96 << 20):                 # v5e / v6e: 128 MiB physical VMEM
        budget = 28 << 20
    else:                                  # v7x: 64 MiB per TensorCore
        budget = 18 << 20
    limit = int(min(phys - (8 << 20), budget + (12 << 20)))
    return budget, limit


def _choose_blocks(N, HW, C_in, D, in_bytes, out_bytes, has_prev, budget):
    """Pick (batch block, HW tile).  HW tile is a multiple of 128 (or full HW);
    batch blocking kicks in when one batch element's blocks stream too few bytes."""
    # HBM-streamed bytes per (batch element, HW column); only streams present.
    per_col = C_in * in_bytes + D * out_bytes + (D * in_bytes if has_prev else 0)
    per_col_db = 2 * per_col               # double-buffered
    cap_cols = max(128, budget // per_col_db)

    if HW <= cap_cols:
        tile_hw = HW                       # full extent (always legal)
    else:
        tile_hw = max(128, (cap_cols // 128) * 128)   # lane-dense multiple of 128

    bn = 1
    target = 2 << 20                       # ~2 MiB of stream per grid step
    if tile_hw >= HW:
        for cand in range(2, N + 1):
            if N % cand:
                continue
            if cand * HW * per_col_db > budget:
                break
            # Keep >=2 parallel grid steps (megacore) once blocks are sizeable.
            if (N // cand) < 2 and bn * HW * per_col >= (512 << 10):
                break
            bn = cand
            if bn * HW * per_col >= target:
                break
    return bn, tile_hw


def observation_function(observation, prev_state, goal, w, b, *,
                         force_mxu=False, out_dtype=None,
                         vmem_budget_bytes=None):
    """Concrete ObservationFunction.forward:
         state = ReLU(Conv1x1(observation) + bias [+ prev_state] [+ goal])
       observation: (N, C_in, H, W) NCHW (any float dtype; streamed natively)
       prev_state:  (N, D, H, W)    NCHW or None
       goal:        (N, D)          or None
       w: (C_in, D), b: (D,)
       returns StateRepr: (N, D, H, W) in `out_dtype` (default: observation.dtype)
    """
    N, C_in, H, W = observation.shape
    D = w.shape[1]
    HW = H * W
    has_prev = prev_state is not None
    has_goal = goal is not None
    out_dtype = observation.dtype if out_dtype is None else out_dtype

    # Native-dtype streams: only contiguity-preserving reshapes — no casts,
    # no transposes, no zero/broadcast materialization in HBM.
    x = observation.reshape(N, C_in, HW)
    w_t = jnp.transpose(w)                 # (D, C_in), tiny + resident
    b2 = b.reshape(D, 1)

    budget, vmem_limit = _vmem_budget_and_limit()
    if vmem_budget_bytes is not None:
        budget = vmem_budget_bytes
    in_bytes = observation.dtype.itemsize
    out_bytes = jnp.dtype(out_dtype).itemsize
    bn, tile_hw = _choose_blocks(N, HW, C_in, D, in_bytes, out_bytes,
                                 has_prev, budget)
    grid = (N // bn, pl.cdiv(HW, tile_hw))

    in_specs = [
        pl.BlockSpec((bn, C_in, tile_hw), lambda n, t: (n, 0, t)),  # observation
        pl.BlockSpec((D, C_in), lambda n, t: (0, 0)),               # weight^T (resident)
        pl.BlockSpec((D, 1), lambda n, t: (0, 0)),                  # bias (resident)
    ]
    args = [x, w_t, b2]
    if has_prev:
        in_specs.append(pl.BlockSpec((bn, D, tile_hw), lambda n, t: (n, 0, t)))
        args.append(prev_state.reshape(N, D, HW))
    if has_goal:
        in_specs.append(pl.BlockSpec((bn, D, 1), lambda n, t: (n, 0, 0)))
        args.append(goal.reshape(N, D, 1))

    use_vpu = (C_in <= 8) and (not force_mxu)
    mxu_dtype = jnp.bfloat16 if observation.dtype == jnp.bfloat16 else jnp.float32
    kernel = _make_kernel(bn, C_in, has_prev, has_goal, use_vpu, mxu_dtype)

    out = pl.pallas_call(
        kernel,
        out_shape=jax.ShapeDtypeStruct((N, D, HW), out_dtype),
        grid_spec=pltpu.PrefetchScalarGridSpec(
            num_scalar_prefetch=0,
            grid=grid,
            in_specs=in_specs,
            out_specs=pl.BlockSpec((bn, D, tile_hw), lambda n, t: (n, 0, t)),
        ),
        compiler_params=pltpu.CompilerParams(
            dimension_semantics=("parallel", "parallel"),
            vmem_limit_bytes=vmem_limit),
    )(*args)

    return out.reshape(N, D, H, W)


if __name__ == "__main__":
    key = jax.random.PRNGKey(0)
    k_obs, k_prev, k_goal, k_w, k_b = jax.random.split(key, 5)

    N, C_in, H, W, D = 2, 4, 16, 16, 32

    observation = jax.random.normal(k_obs, (N, C_in, H, W), jnp.float32)
    prev_state = jax.random.normal(k_prev, (N, D, H, W), jnp.float32)
    goal = jax.random.normal(k_goal, (N, D), jnp.float32)
    w = jax.random.normal(k_w, (C_in, D), jnp.float32) * 0.1
    b = jax.random.normal(k_b, (D,), jnp.float32) * 0.1

    def ref_fn(obs, prev, gl, wp, bp):
        r = jnp.einsum("nchw,cd->ndhw",
                       obs.astype(jnp.float32), wp.astype(jnp.float32))
        r = r + bp.astype(jnp.float32)[None, :, None, None]
        if prev is not None:
            r = r + prev.astype(jnp.float32)
        if gl is not None:
            r = r + gl.astype(jnp.float32)[:, :, None, None]
        return jnp.maximum(r, 0.0)

    ref = ref_fn(observation, prev_state, goal, w, b)

    # 1) f32 inputs, VPU MAC path, batch-blocked grid.
    out = jax.block_until_ready(
        observation_function(observation, prev_state, goal, w, b))
    assert out.shape == (N, D, H, W) and out.dtype == jnp.float32
    assert jnp.allclose(out, ref, atol=1e-4, rtol=1e-4)

    # 2) f32 inputs, MXU contraction path (f32 operands kept for precision).
    out_mxu = jax.block_until_ready(
        observation_function(observation, prev_state, goal, w, b, force_mxu=True))
    assert jnp.allclose(out_mxu, ref, atol=1e-4, rtol=1e-4)

    # 3) Specialized variant: prev_state=None, goal=None (no zero streams).
    out_none = jax.block_until_ready(
        observation_function(observation, None, None, w, b))
    assert jnp.allclose(out_none, ref_fn(observation, None, None, w, b),
                        atol=1e-4, rtol=1e-4)

    # 4) bf16 streamed natively (cast to f32 in-kernel, bf16 output), both paths.
    obs_bf = observation.astype(jnp.bfloat16)
    prev_bf = prev_state.astype(jnp.bfloat16)
    goal_bf = goal.astype(jnp.bfloat16)
    w_bf = w.astype(jnp.bfloat16)
    b_bf = b.astype(jnp.bfloat16)
    ref_bf = ref_fn(obs_bf, prev_bf, goal_bf, w_bf, b_bf)
    out_bf = jax.block_until_ready(
        observation_function(obs_bf, prev_bf, goal_bf, w_bf, b_bf))
    assert out_bf.dtype == jnp.bfloat16
    assert jnp.allclose(out_bf.astype(jnp.float32), ref_bf, atol=1e-1, rtol=5e-2)
    out_bf_mxu = jax.block_until_ready(
        observation_function(obs_bf, prev_bf, goal_bf, w_bf, b_bf, force_mxu=True))
    assert jnp.allclose(out_bf_mxu.astype(jnp.float32), ref_bf, atol=1e-1, rtol=5e-2)

    # 5) Multi-tile path with a partial edge tile (H*W not a multiple of 128),
    #    forced by a tiny VMEM budget — exercises the cdiv grid + masked edge.
    H2, W2 = 10, 13
    obs2 = jax.random.normal(k_obs, (N, C_in, H2, W2), jnp.float32)
    prev2 = jax.random.normal(k_prev, (N, D, H2, W2), jnp.float32)
    out2 = jax.block_until_ready(
        observation_function(obs2, prev2, goal, w, b,
                             vmem_budget_bytes=64 * 1024))
    assert jnp.allclose(out2, ref_fn(obs2, prev2, goal, w, b),
                        atol=1e-4, rtol=1e-4)

    print("KERNEL_OK")
</pallas_src>

<mosaic_0001>
module attributes {stable_mosaic.version = 11 : i64} {
  func.func @kernel(%arg0: i32, %arg1: i32, %arg2: memref<2x4x256xf32, #tpu.memory_space<vmem>>, %arg3: memref<32x4xf32, #tpu.memory_space<vmem>>, %arg4: memref<32x1xf32, #tpu.memory_space<vmem>>, %arg5: memref<2x32x256xf32, #tpu.memory_space<vmem>>, %arg6: memref<2x32x1xf32, #tpu.memory_space<vmem>>, %arg7: memref<2x32x256xf32, #tpu.memory_space<vmem>>) attributes {dimension_semantics = [#tpu.dimension_semantics<parallel>, #tpu.dimension_semantics<parallel>], iteration_bounds = array<i64: 1, 1>, scalar_prefetch = 0 : i64, scratch_operands = 0 : i64, tpu.core_type = #tpu.core_type<tc>, window_params = [{transform_indices = @transform_0, window_bounds = array<i64: 2, 4, 256>}, {pipeline_mode = #tpu.pipeline_mode<synchronous>, transform_indices = @transform_1, window_bounds = array<i64: 32, 4>}, {pipeline_mode = #tpu.pipeline_mode<synchronous>, transform_indices = @transform_2, window_bounds = array<i64: 32, 1>}, {transform_indices = @transform_3, window_bounds = array<i64: 2, 32, 256>}, {transform_indices = @transform_4, window_bounds = array<i64: 2, 32, 1>}, {transform_indices = @transform_5, window_bounds = array<i64: 2, 32, 256>}]} {
    %c0 = arith.constant 0 : index
    %c0_0 = arith.constant 0 : index
    %0 = vector.load %arg4[%c0, %c0_0] : memref<32x1xf32, #tpu.memory_space<vmem>>, vector<32x1xf32>
    %c0_1 = arith.constant 0 : index
    %c0_2 = arith.constant 0 : index
    %1 = vector.load %arg3[%c0_1, %c0_2] : memref<32x4xf32, #tpu.memory_space<vmem>>, vector<32x4xf32>
    %c0_3 = arith.constant 0 : index
    %c0_4 = arith.constant 0 : index
    %c0_5 = arith.constant 0 : index
    %2 = vector.load %arg6[%c0_3, %c0_4, %c0_5] : memref<2x32x1xf32, #tpu.memory_space<vmem>>, vector<1x32x1xf32>
    %3 = vector.shape_cast %2 : vector<1x32x1xf32> to vector<32x1xf32>
    %4 = arith.addf %0, %3 : vector<32x1xf32>
    %c0_6 = arith.constant 0 : index
    %c0_7 = arith.constant 0 : index
    %c0_8 = arith.constant 0 : index
    %5 = vector.load %arg2[%c0_6, %c0_7, %c0_8] : memref<2x4x256xf32, #tpu.memory_space<vmem>>, vector<1x4x256xf32>
    %6 = vector.shape_cast %5 : vector<1x4x256xf32> to vector<4x256xf32>
    %7 = vector.extract_strided_slice %1 {offsets = [0, 0], sizes = [32, 1], strides = [1, 1]} : vector<32x4xf32> to vector<32x1xf32>
    %8 = vector.extract_strided_slice %6 {offsets = [0, 0], sizes = [1, 256], strides = [1, 1]} : vector<4x256xf32> to vector<1x256xf32>
    %9 = vector.broadcast %7 : vector<32x1xf32> to vector<32x256xf32>
    %10 = vector.broadcast %8 : vector<1x256xf32> to vector<32x256xf32>
    %11 = arith.mulf %9, %10 : vector<32x256xf32>
    %12 = vector.broadcast %4 : vector<32x1xf32> to vector<32x256xf32>
    %13 = arith.addf %11, %12 : vector<32x256xf32>
    %14 = vector.extract_strided_slice %1 {offsets = [0, 1], sizes = [32, 1], strides = [1, 1]} : vector<32x4xf32> to vector<32x1xf32>
    %15 = vector.extract_strided_slice %6 {offsets = [1, 0], sizes = [1, 256], strides = [1, 1]} : vector<4x256xf32> to vector<1x256xf32>
    %16 = vector.broadcast %14 : vector<32x1xf32> to vector<32x256xf32>
    %17 = vector.broadcast %15 : vector<1x256xf32> to vector<32x256xf32>
    %18 = arith.mulf %16, %17 : vector<32x256xf32>
    %19 = arith.addf %13, %18 : vector<32x256xf32>
    %20 = vector.extract_strided_slice %1 {offsets = [0, 2], sizes = [32, 1], strides = [1, 1]} : vector<32x4xf32> to vector<32x1xf32>
    %21 = vector.extract_strided_slice %6 {offsets = [2, 0], sizes = [1, 256], strides = [1, 1]} : vector<4x256xf32> to vector<1x256xf32>
    %22 = vector.broadcast %20 : vector<32x1xf32> to vector<32x256xf32>
    %23 = vector.broadcast %21 : vector<1x256xf32> to vector<32x256xf32>
    %24 = arith.mulf %22, %23 : vector<32x256xf32>
    %25 = arith.addf %19, %24 : vector<32x256xf32>
    %26 = vector.extract_strided_slice %1 {offsets = [0, 3], sizes = [32, 1], strides = [1, 1]} : vector<32x4xf32> to vector<32x1xf32>
    %27 = vector.extract_strided_slice %6 {offsets = [3, 0], sizes = [1, 256], strides = [1, 1]} : vector<4x256xf32> to vector<1x256xf32>
    %28 = vector.broadcast %26 : vector<32x1xf32> to vector<32x256xf32>
    %29 = vector.broadcast %27 : vector<1x256xf32> to vector<32x256xf32>
    %30 = arith.mulf %28, %29 : vector<32x256xf32>
    %31 = arith.addf %25, %30 : vector<32x256xf32>
    %c0_9 = arith.constant 0 : index
    %c0_10 = arith.constant 0 : index
    %c0_11 = arith.constant 0 : index
    %32 = vector.load %arg5[%c0_9, %c0_10, %c0_11] : memref<2x32x256xf32, #tpu.memory_space<vmem>>, vector<1x32x256xf32>
    %33 = vector.shape_cast %32 : vector<1x32x256xf32> to vector<32x256xf32>
    %34 = arith.addf %31, %33 : vector<32x256xf32>
    %cst = arith.constant 0.000000e+00 : f32
    %35 = vector.broadcast %cst : f32 to vector<32x256xf32>
    %36 = arith.maximumf %34, %35 : vector<32x256xf32>
    %c0_12 = arith.constant 0 : index
    %c0_13 = arith.constant 0 : index
    %c0_14 = arith.constant 0 : index
    %37 = vector.load %arg7[%c0_12, %c0_13, %c0_14] : memref<2x32x256xf32, #tpu.memory_space<vmem>>, vector<1x32x256xf32>
    %38 = vector.shape_cast %37 : vector<1x32x256xf32> to vector<32x256xf32>
    %39 = vector.shape_cast %36 : vector<32x256xf32> to vector<1x32x256xf32>
    tpu.vector_store %arg7[%c0_12, %c0_13, %c0_14], %39 {strides = array<i32>} : memref<2x32x256xf32, #tpu.memory_space<vmem>>, vector<1x32x256xf32>,
    %c1 = arith.constant 1 : index
    %c0_15 = arith.constant 0 : index
    %c0_16 = arith.constant 0 : index
    %40 = vector.load %arg6[%c1, %c0_15, %c0_16] : memref<2x32x1xf32, #tpu.memory_space<vmem>>, vector<1x32x1xf32>
    %41 = vector.shape_cast %40 : vector<1x32x1xf32> to vector<32x1xf32>
    %42 = arith.addf %0, %41 : vector<32x1xf32>
    %c1_17 = arith.constant 1 : index
    %c0_18 = arith.constant 0 : index
    %c0_19 = arith.constant 0 : index
    %43 = vector.load %arg2[%c1_17, %c0_18, %c0_19] : memref<2x4x256xf32, #tpu.memory_space<vmem>>, vector<1x4x256xf32>
    %44 = vector.shape_cast %43 : vector<1x4x256xf32> to vector<4x256xf32>
    %45 = vector.extract_strided_slice %1 {offsets = [0, 0], sizes = [32, 1], strides = [1, 1]} : vector<32x4xf32> to vector<32x1xf32>
    %46 = vector.extract_strided_slice %44 {offsets = [0, 0], sizes = [1, 256], strides = [1, 1]} : vector<4x256xf32> to vector<1x256xf32>
    %47 = vector.broadcast %45 : vector<32x1xf32> to vector<32x256xf32>
    %48 = vector.broadcast %46 : vector<1x256xf32> to vector<32x256xf32>
    %49 = arith.mulf %47, %48 : vector<32x256xf32>
    %50 = vector.broadcast %42 : vector<32x1xf32> to vector<32x256xf32>
    %51 = arith.addf %49, %50 : vector<32x256xf32>
    %52 = vector.extract_strided_slice %1 {offsets = [0, 1], sizes = [32, 1], strides = [1, 1]} : vector<32x4xf32> to vector<32x1xf32>
    %53 = vector.extract_strided_slice %44 {offsets = [1, 0], sizes = [1, 256], strides = [1, 1]} : vector<4x256xf32> to vector<1x256xf32>
    %54 = vector.broadcast %52 : vector<32x1xf32> to vector<32x256xf32>
    %55 = vector.broadcast %53 : vector<1x256xf32> to vector<32x256xf32>
    %56 = arith.mulf %54, %55 : vector<32x256xf32>
    %57 = arith.addf %51, %56 : vector<32x256xf32>
    %58 = vector.extract_strided_slice %1 {offsets = [0, 2], sizes = [32, 1], strides = [1, 1]} : vector<32x4xf32> to vector<32x1xf32>
    %59 = vector.extract_strided_slice %44 {offsets = [2, 0], sizes = [1, 256], strides = [1, 1]} : vector<4x256xf32> to vector<1x256xf32>
    %60 = vector.broadcast %58 : vector<32x1xf32> to vector<32x256xf32>
    %61 = vector.broadcast %59 : vector<1x256xf32> to vector<32x256xf32>
    %62 = arith.mulf %60, %61 : vector<32x256xf32>
    %63 = arith.addf %57, %62 : vector<32x256xf32>
    %64 = vector.extract_strided_slice %1 {offsets = [0, 3], sizes = [32, 1], strides = [1, 1]} : vector<32x4xf32> to vector<32x1xf32>
    %65 = vector.extract_strided_slice %44 {offsets = [3, 0], sizes = [1, 256], strides = [1, 1]} : vector<4x256xf32> to vector<1x256xf32>
    %66 = vector.broadcast %64 : vector<32x1xf32> to vector<32x256xf32>
    %67 = vector.broadcast %65 : vector<1x256xf32> to vector<32x256xf32>
    %68 = arith.mulf %66, %67 : vector<32x256xf32>
    %69 = arith.addf %63, %68 : vector<32x256xf32>
    %c1_20 = arith.constant 1 : index
    %c0_21 = arith.constant 0 : index
    %c0_22 = arith.constant 0 : index
    %70 = vector.load %arg5[%c1_20, %c0_21, %c0_22] : memref<2x32x256xf32, #tpu.memory_space<vmem>>, vector<1x32x256xf32>
    %71 = vector.shape_cast %70 : vector<1x32x256xf32> to vector<32x256xf32>
    %72 = arith.addf %69, %71 : vector<32x256xf32>
    %cst_23 = arith.constant 0.000000e+00 : f32
    %73 = vector.broadcast %cst_23 : f32 to vector<32x256xf32>
    %74 = arith.maximumf %72, %73 : vector<32x256xf32>
    %c1_24 = arith.constant 1 : index
    %c0_25 = arith.constant 0 : index
    %c0_26 = arith.constant 0 : index
    %75 = vector.load %arg7[%c1_24, %c0_25, %c0_26] : memref<2x32x256xf32, #tpu.memory_space<vmem>>, vector<1x32x256xf32>
    %76 = vector.shape_cast %75 : vector<1x32x256xf32> to vector<32x256xf32>
    %77 = vector.shape_cast %74 : vector<32x256xf32> to vector<1x32x256xf32>
    tpu.vector_store %arg7[%c1_24, %c0_25, %c0_26], %77 {strides = array<i32>} : memref<2x32x256xf32, #tpu.memory_space<vmem>>, vector<1x32x256xf32>,
    return
  }
  func.func @transform_0(%arg0: i32, %arg1: i32) -> (i32, i32, i32) {
    %c0_i32 = arith.constant 0 : i32
    %c0_i32_0 = arith.constant 0 : i32
    return %arg0, %c0_i32, %arg1 : i32, i32, i32
  }
  func.func @transform_1(%arg0: i32, %arg1: i32) -> (i32, i32) {
    %c0_i32 = arith.constant 0 : i32
    %c0_i32_0 = arith.constant 0 : i32
    %c0_i32_1 = arith.constant 0 : i32
    return %c0_i32, %c0_i32_0 : i32, i32
  }
  func.func @transform_2(%arg0: i32, %arg1: i32) -> (i32, i32) {
    %c0_i32 = arith.constant 0 : i32
    %c0_i32_0 = arith.constant 0 : i32
    %c0_i32_1 = arith.constant 0 : i32
    return %c0_i32, %c0_i32_0 : i32, i32
  }
  func.func @transform_3(%arg0: i32, %arg1: i32) -> (i32, i32, i32) {
    %c0_i32 = arith.constant 0 : i32
    %c0_i32_0 = arith.constant 0 : i32
    return %arg0, %c0_i32, %arg1 : i32, i32, i32
  }
  func.func @transform_4(%arg0: i32, %arg1: i32) -> (i32, i32, i32) {
    %c0_i32 = arith.constant 0 : i32
    %c0_i32_0 = arith.constant 0 : i32
    %c0_i32_1 = arith.constant 0 : i32
    return %arg0, %c0_i32, %c0_i32_0 : i32, i32, i32
  }
  func.func @transform_5(%arg0: i32, %arg1: i32) -> (i32, i32, i32) {
    %c0_i32 = arith.constant 0 : i32
    %c0_i32_0 = arith.constant 0 : i32
    return %arg0, %c0_i32, %arg1 : i32, i32, i32
  }
}

</mosaic_0001>

<bundles_post_ra>
// kernel: tpu_custom_call.1
= control target key start
LH: loop header
LB: loop body
LE: loop exit
PB: predicated region body
PF: predicated region fallthrough
CT: control target
= control target key end

     0   :  { %v567_v2 = vmov 1   ;;  %v568_v3 = vmov 0   ;;  %s858_s0 = inlined_call_operand.vmem [shape: f32[2,4,256], index: 0, kind: input, shape index: {}]   ;;  %s859_s1 = inlined_call_operand.vmem [shape: f32[32,4], index: 1, kind: input, shape index: {}]   ;;  %s860_s2 = inlined_call_operand.vmem [shape: f32[32,1], index: 2, kind: input, shape index: {}]   ;;  %s861_s3 = inlined_call_operand.vmem [shape: f32[2,32,256], index: 3, kind: input, shape index: {}]   ;;  %s862_s4 = inlined_call_operand.vmem [shape: f32[2,32,1], index: 4, kind: input, shape index: {}]   ;;  %s863_s5 = inlined_call_operand.hbm [shape: f32[2,32,256], index: 5, kind: output, shape index: {}]  }
   0x1   :  { %v27_v0 = vld [vmem:[%s859_s1 + $0x10] sm:$0xff]  ;;  %v25_v1 = vld [vmem:[%s859_s1] sm:$0xff]  ;;  %534 = vset.pattern.permute.xlu0 %v567_v2  ;;  %533 = vset.pattern.permute.xlu1 %v568_v3  ;;  %v28_v4 = vld [vmem:[%s859_s1 + $0x18] sm:$0xff] }
   0x2   :  { %50 = vperm.xlu1 %533, %v27_v0   ;;  %114 = vperm.xlu0 %534, %v25_v1   ;;  %v22_v5 = vld [vmem:[%s860_s2 + $0x8] sm:$0xff] }
   0x3   :  { %v30_v6 = vld [vmem:[%s862_s4 + $0x8] sm:$0xff] }
   0x4   :  { %v34_v7 = vadd.f32 %v30_v6, %v22_v5 }
   0x6   :  { %55 = vperm.xlu1 %533, %v28_v4   ;;  %126 = vperm.xlu0 %534, %v28_v4  }
   0x7   :  { %10 = vsyncpa [#allocation3], 0  ;;  %v24_v8 = vld [vmem:[%s860_s2 + $0x18] sm:$0xff]  ;;  %v26_v11 = vld [vmem:[%s859_s1 + $0x8] sm:$0xff]  ;;  %v569_v25 = vmov 2   ;;  %v570_v27 = vmov 3   ;;  %v59_v30 = vlaneseq }
   0x8   :  { %v32_v9 = vld [vmem:[%s862_s4 + $0x18] sm:$0xff]  ;;  %v21_v12 = vld [vmem:[%s860_s2] sm:$0xff]  ;;  %v23_v15 = vld [vmem:[%s860_s2 + $0x10] sm:$0xff]  ;;  %s571_s28 = smov [#allocation2]  }
   0x9   :  { %v36_v10 = vadd.f32 %v32_v9, %v24_v8  ;;  %v29_v13 = vld [vmem:[%s862_s4] sm:$0xff]  ;;  %v31_v16 = vld [vmem:[%s862_s4 + $0x10] sm:$0xff]  ;;  %v514_v18 = vld [vmem:[%s862_s4 + $0x28] sm:$0xff]  ;;  %v60_v33 = vshrl.u32 %v59_v30, 7  ;;  %s502_s29 = sshll.u32 %s571_s28, 4  ;;  %s503_s29 = int_to_ptr.vmem [resolvable:$true] %s502_s29 }
   0xa   :  { %536 = vset.pattern.permute.xlu0 %v568_v3  ;;  %92 = vperm.xlu1 %533, %v34_v7   ;;  %v33_v14 = vadd.f32 %v29_v13, %v21_v12  ;;  %v35_v17 = vadd.f32 %v31_v16, %v23_v15  ;;  %v513_v19 = vld [vmem:[%s862_s4 + $0x20] sm:$0xff]  ;;  %v301_v20 = vadd.f32 %v514_v18, %v22_v5  ;;  %v515_v22 = vld [vmem:[%s862_s4 + $0x30] sm:$0xff]  ;;  %v516_v24 = vld [vmem:[%s862_s4 + $0x38] sm:$0xff]  ;;  %p548_p1 = scmp.lt.s32.totalorder %s503_s29, %s503_s29 }
   0xb   :  { %40 = vperm.xlu0 %536, %v25_v1   ;;  %v300_v21 = vadd.f32 %v513_v19, %v21_v12  ;;  %v302_v23 = vadd.f32 %v515_v22, %v23_v15  ;;  %v303_v26 = vadd.f32 %v516_v24, %v24_v8  ;;  %v61_v36 = vsub.s32 0, %v60_v33  ;;  %v37_v38 = vld [vmem:[%s858_s0] sm:$0xff]  ;;  %v517_v42 = vld [vmem:[%s858_s0 + $0x8] sm:$0xff] }
   0xc   :  { %v65_v37 = vsub.s32 4, %v60_v33  ;;  %v131_v39 = vsub.s32 1, %v60_v33  ;;  %v135_v40 = vsub.s32 5, %v60_v33  ;;  %v181_v44 = vsub.s32 2, %v60_v33 }
   0xd   :  { %v185_v45 = vsub.s32 6, %v60_v33  ;;  %v231_v46 = vsub.s32 3, %v60_v33  ;;  %v235_v47 = vsub.s32 7, %v60_v33  ;;  %v62_v48 = vrot.slane %v37_v38, %v61_v36 }
   0xe   :  { %102 = vperm.xlu1 %533, %v36_v10   ;;  %v66_v49 = vrot.slane %v37_v38, %v65_v37  ;;  %v310_v50 = vrot.slane %v517_v42, %v61_v36  ;;  %v314_v51 = vrot.slane %v517_v42, %v65_v37  ;;  %v132_v52 = vrot.slane %v37_v38, %v131_v39 }
   0xf   :  { %45 = vperm.xlu0 %536, %v26_v11   ;;  %v136_v53 = vrot.slane %v37_v38, %v135_v40  ;;  %v364_v54 = vrot.slane %v517_v42, %v131_v39  ;;  %v368_v55 = vrot.slane %v517_v42, %v135_v40  ;;  %v182_v58 = vrot.slane %v37_v38, %v181_v44 }
  0x10   :  { %v186_v59 = vrot.slane %v37_v38, %v185_v45  ;;  %v398_v60 = vrot.slane %v517_v42, %v181_v44  ;;  %v402_v61 = vrot.slane %v517_v42, %v185_v45  ;;  %v232_v62 = vrot.slane %v37_v38, %v231_v46 }
  0x11   :  { %v236_v63 = vrot.slane %v37_v38, %v235_v47  ;;  %v324_v5 = vrot.slane %v314_v51, %v61_v36  ;;  %v142_v6 = vrot.slane %v132_v52, %v131_v39  ;;  %v146_v7 = vrot.slane %v136_v53, %v131_v39 }
  0x12   :  { %535 = vset.pattern.permute.xlu1 %v567_v2  ;;  %v72_v2 = vrot.slane %v62_v48, %v61_v36  ;;  %v674_v8 = vrot.slane %v364_v54, %v131_v39  ;;  %v676_v9 = vrot.slane %v368_v55, %v131_v39  ;;  %v680_v12 = vrot.slane %v182_v58, %v181_v44 }
  0x13   :  { %118 = vperm.xlu1 %535, %v26_v11   ;;  %87 = vperm.xlu0 %536, %v33_v14   ;;  %v682_v13 = vrot.slane %v186_v59, %v181_v44  ;;  %v684_v14 = vrot.slane %v398_v60, %v181_v44  ;;  %v686_v15 = vrot.slane %v402_v61, %v181_v44 }
  0x14   :  { %v688_v16 = vrot.slane %v232_v62, %v231_v46 }
  0x17   :  { %122 = vperm.xlu1 %535, %v27_v0   ;;  %97 = vperm.xlu0 %536, %v35_v17   ;;  %v690_v17 = vrot.slane %v236_v63, %v231_v46 }
  0x1b   :  { %537 = vset.pattern.permute.xlu1 %v568_v3  ;;  %340 = vperm.xlu0 %536, %v301_v20  }
  0x1c   :  { %335 = vperm.xlu1 %537, %v300_v21  }
  0x1f   :  { %538 = vset.pattern.permute.xlu0 %v569_v25 }
  0x20   :  { %345 = vperm.xlu1 %537, %v302_v23   ;;  %164 = vperm.xlu0 %538, %v25_v1  }
  0x24   :  { %350 = vperm.xlu1 %537, %v303_v26   ;;  %176 = vperm.xlu0 %538, %v28_v4  }
  0x28   :  { %539 = vset.pattern.permute.xlu1 %v569_v25  ;;  %541 = vset.pattern.permute.xlu0 %v570_v27 }
  0x29   :  { %168 = vperm.xlu1 %539, %v26_v11   ;;  %218 = vperm.xlu0 %541, %v26_v11  }
  0x2d   :  { %172 = vperm.xlu1 %539, %v27_v0   ;;  %542 = vset.pattern.permute.xlu0 %v568_v3  ;;  %v76_v3 = vrot.slane %v66_v49, %v61_v36 }
  0x31   :  { %540 = vset.pattern.permute.xlu1 %v570_v27 }
  0x32   :  { %214 = vperm.xlu1 %540, %v25_v1   ;;  %v436_v1 = vrot.slane %v517_v42, %v235_v47 }
  0x34   :  { %v694_v19 = vrot.slane %v436_v1, %v231_v46 }
  0x36   :  { %222 = vperm.xlu1 %540, %v27_v0   ;;  %v432_v0 = vrot.slane %v517_v42, %v231_v46 }
  0x38   :  { %v692_v18 = vrot.slane %v432_v0, %v231_v46 }
  0x3a   :  { %226 = vperm.xlu1 %540, %v28_v4   ;;  %v320_v4 = vrot.slane %v310_v50, %v61_v36 }
  0x81   :  { %v652_v28 = vpop.permute.xlu1 %50  ;;  %v115_v29 = vpop.permute.xlu0 %114 }
  0x82   :  { %v147_v22 = vmul.f32 %v142_v6, %v115_v29  ;;  %v148_v23 = vmul.f32 %v146_v7, %v115_v29  ;;  %v81_v24 = vmul.f32 %v72_v2, %v652_v28  ;;  %v82_v25 = vmul.f32 %v76_v3, %v652_v28 }
  0x83   :  { %v379_v26 = vmul.f32 %v674_v8, %v115_v29  ;;  %v380_v27 = vmul.f32 %v676_v9, %v115_v29  ;;  %v329_v44 = vmul.f32 %v320_v4, %v652_v28  ;;  %v330_v45 = vmul.f32 %v324_v5, %v652_v28 }
  0x85   :  { %v654_v31 = vpop.permute.xlu1 %55  ;;  %v656_v32 = vpop.permute.xlu0 %126 }
  0x86   :  { %v83_v20 = vmul.f32 %v72_v2, %v654_v31  ;;  %v84_v21 = vmul.f32 %v76_v3, %v654_v31  ;;  %v153_v30 = vmul.f32 %v142_v6, %v656_v32  ;;  %v154_v33 = vmul.f32 %v146_v7, %v656_v32 }
  0x87   :  { %v331_v47 = vmul.f32 %v320_v4, %v654_v31  ;;  %v332_v48 = vmul.f32 %v324_v5, %v654_v31  ;;  %v716_v50 = vmul.f32 %v674_v8, %v656_v32  ;;  %v720_v51 = vmul.f32 %v676_v9, %v656_v32 }
  0x89   :  { %v658_v34 = vpop.permute.xlu1 %92 }
  0x8a   :  { %v660_v35 = vpop.permute.xlu0 %40 }
  0x8b   :  { %v77_v46 = vmul.f32 %v72_v2, %v660_v35  ;;  %v78_v29 = vmul.f32 %v76_v3, %v660_v35  ;;  %v326_v49 = vmul.f32 %v324_v5, %v660_v35 }
  0x8d   :  { %v103_v41 = vpop.permute.xlu1 %102 }
  0x8e   :  { %v668_v43 = vpop.permute.xlu0 %45  ;;  %v111_v36 = vadd.f32 %v103_v41, %v83_v20  ;;  %v112_v37 = vadd.f32 %v103_v41, %v84_v21  ;;  %v325_v41 = vmul.f32 %v320_v4, %v660_v35 }
  0x8f   :  { %v79_v39 = vmul.f32 %v72_v2, %v668_v43  ;;  %v80_v40 = vmul.f32 %v76_v3, %v668_v43  ;;  %v327_v53 = vmul.f32 %v320_v4, %v668_v43  ;;  %v328_v31 = vmul.f32 %v324_v5, %v668_v43 }
  0x90   :  { %v722_v28 = vadd.f32 %v153_v30, %v111_v36  ;;  %v724_v52 = vadd.f32 %v154_v33, %v112_v37 }
  0x91   :  { %v107_v54 = vadd.f32 %v658_v34, %v79_v39  ;;  %v108_v35 = vadd.f32 %v658_v34, %v80_v40 }
  0x92   :  { %v670_v56 = vpop.permute.xlu1 %118  ;;  %v672_v57 = vpop.permute.xlu0 %87 }
  0x93   :  { %v149_v55 = vmul.f32 %v142_v6, %v670_v56  ;;  %v150_v58 = vmul.f32 %v146_v7, %v670_v56  ;;  %v105_v32 = vadd.f32 %v672_v57, %v77_v46  ;;  %v106_v61 = vadd.f32 %v672_v57, %v78_v29 }
  0x94   :  { %v381_v62 = vmul.f32 %v674_v8, %v670_v56  ;;  %v382_v43 = vmul.f32 %v676_v9, %v670_v56 }
  0x95   :  { %v157_v20 = vadd.f32 %v149_v55, %v107_v54  ;;  %v158_v21 = vadd.f32 %v150_v58, %v108_v35  ;;  %v155_v36 = vadd.f32 %v147_v22, %v105_v32  ;;  %v156_v37 = vadd.f32 %v148_v23, %v106_v61 }
  0x96   :  { %v678_v10 = vpop.permute.xlu1 %122  ;;  %v98_v11 = vpop.permute.xlu0 %97 }
  0x97   :  { %v151_v63 = vmul.f32 %v142_v6, %v678_v10  ;;  %v152_v34 = vmul.f32 %v146_v7, %v678_v10  ;;  %v109_v0 = vadd.f32 %v98_v11, %v81_v24  ;;  %v110_v1 = vadd.f32 %v98_v11, %v82_v25 }
  0x98   :  { %v383_v11 = vmul.f32 %v674_v8, %v678_v10  ;;  %v384_v24 = vmul.f32 %v676_v9, %v678_v10 }
  0x99   :  { %v742_v40 = vadd.f32 %v151_v63, %v109_v0  ;;  %v744_v7 = vadd.f32 %v152_v34, %v110_v1  ;;  %v266_v34 = vld [vmem:[%s861_s3 + $0x18] sm:$0xff]  ;;  %v520_v0 = vld [vmem:[%s861_s3 + $0x50] sm:$0xff] }
  0x9a   :  { %v341_v38 = vpop.permute.xlu0 %340  ;;  %v521_v1 = vld [vmem:[%s861_s3 + $0x58] sm:$0xff] }
  0x9b   :  { %v336_v42 = vpop.permute.xlu1 %335  ;;  %v355_v2 = vadd.f32 %v341_v38, %v327_v53  ;;  %v356_v3 = vadd.f32 %v341_v38, %v328_v31 }
  0x9c   :  { %v353_v4 = vadd.f32 %v336_v42, %v325_v41  ;;  %v354_v5 = vadd.f32 %v336_v42, %v326_v49 }
  0x9d   :  { %v389_v25 = vadd.f32 %v381_v62, %v355_v2  ;;  %v390_v38 = vadd.f32 %v382_v43, %v356_v3 }
  0x9e   :  { %v387_v42 = vadd.f32 %v379_v26, %v353_v4  ;;  %v388_v22 = vadd.f32 %v380_v27, %v354_v5 }
  0x9f   :  { %v346_v59 = vpop.permute.xlu1 %345  ;;  %v165_v60 = vpop.permute.xlu0 %164 }
  0xa0   :  { %v357_v30 = vadd.f32 %v346_v59, %v329_v44  ;;  %v358_v57 = vadd.f32 %v346_v59, %v330_v45  ;;  %v197_v39 = vmul.f32 %v680_v12, %v165_v60  ;;  %v198_v56 = vmul.f32 %v682_v13, %v165_v60  ;;  %v265_v59 = vld [vmem:[%s861_s3 + $0x10] sm:$0xff] }
  0xa1   :  { %v413_v45 = vmul.f32 %v684_v14, %v165_v60  ;;  %v414_v46 = vmul.f32 %v686_v15, %v165_v60 }
  0xa2   :  { %v750_v23 = vadd.f32 %v383_v11, %v357_v30  ;;  %v752_v44 = vadd.f32 %v384_v24, %v358_v57  ;;  %v756_v29 = vadd.f32 %v197_v39, %v155_v36  ;;  %v758_v41 = vadd.f32 %v198_v56, %v156_v37 }
  0xa3   :  { %v351_v33 = vpop.permute.xlu1 %350  ;;  %v177_v6 = vpop.permute.xlu0 %176  ;;  %v421_v61 = vadd.f32 %v413_v45, %v387_v42  ;;  %v422_v62 = vadd.f32 %v414_v46, %v388_v22 }
  0xa4   :  { %v359_v8 = vadd.f32 %v351_v33, %v331_v47  ;;  %v360_v49 = vadd.f32 %v351_v33, %v332_v48  ;;  %v203_v43 = vmul.f32 %v680_v12, %v177_v6  ;;  %v204_v63 = vmul.f32 %v682_v13, %v177_v6 }
  0xa5   :  { %v419_v57 = vmul.f32 %v684_v14, %v177_v6  ;;  %v420_v33 = vmul.f32 %v686_v15, %v177_v6  ;;  %v263_v6 = vld [vmem:[%s861_s3] sm:$0xff] }
  0xa6   :  { %v394_v30 = vadd.f32 %v720_v51, %v360_v49  ;;  %v519_v49 = vld [vmem:[%s861_s3 + $0x48] sm:$0xff] }
  0xa8   :  { %v169_v53 = vpop.permute.xlu1 %168  ;;  %v219_v9 = vpop.permute.xlu0 %218 }
  0xa9   :  { %v199_v10 = vmul.f32 %v680_v12, %v169_v53  ;;  %v200_v26 = vmul.f32 %v682_v13, %v169_v53  ;;  %v415_v27 = vmul.f32 %v684_v14, %v169_v53  ;;  %v416_v31 = vmul.f32 %v686_v15, %v169_v53 }
  0xaa   :  { %v249_v54 = vmul.f32 %v688_v16, %v219_v9  ;;  %v250_v35 = vmul.f32 %v690_v17, %v219_v9  ;;  %v449_v55 = vmul.f32 %v692_v18, %v219_v9  ;;  %v450_v58 = vmul.f32 %v694_v19, %v219_v9 }
  0xab   :  { %v207_v47 = vadd.f32 %v199_v10, %v157_v20  ;;  %v208_v48 = vadd.f32 %v200_v26, %v158_v21  ;;  %v423_v60 = vadd.f32 %v415_v27, %v389_v25  ;;  %v424_v32 = vadd.f32 %v416_v31, %v390_v38 }
  0xac   :  { %v173_v2 = vpop.permute.xlu1 %172  ;;  %v393_v21 = vadd.f32 %v716_v50, %v359_v8  ;;  %v211_v53 = vadd.f32 %v203_v43, %v722_v28  ;;  %v212_v9 = vadd.f32 %v204_v63, %v724_v52  ;;  %v428_v26 = vadd.f32 %v420_v33, %v394_v30 }
  0xad   :  { %v257_v3 = vadd.f32 %v249_v54, %v207_v47  ;;  %v258_v4 = vadd.f32 %v250_v35, %v208_v48  ;;  %v457_v5 = vadd.f32 %v449_v55, %v423_v60  ;;  %v458_v20 = vadd.f32 %v450_v58, %v424_v32 }
  0xae   :  { %v201_v11 = vmul.f32 %v680_v12, %v173_v2  ;;  %v202_v24 = vmul.f32 %v682_v13, %v173_v2  ;;  %v417_v25 = vmul.f32 %v684_v14, %v173_v2  ;;  %v418_v38 = vmul.f32 %v686_v15, %v173_v2  ;;  %v264_v14 = vld [vmem:[%s861_s3 + $0x8] sm:$0xff]  ;;  %v518_v15 = vld [vmem:[%s861_s3 + $0x40] sm:$0xff] }
  0xaf   :  { %v273_v36 = vadd.f32 %v265_v59, %v257_v3  ;;  %v274_v37 = vadd.f32 %v266_v34, %v258_v4  ;;  %v474_v39 = vadd.f32 %v520_v0, %v457_v5  ;;  %v475_v56 = vadd.f32 %v521_v1, %v458_v20  ;;  %v522_v34 = vld [vmem:[%s861_s3 + $0x60] sm:$0xff]  ;;  %v523_v0 = vld [vmem:[%s861_s3 + $0x68] sm:$0xff]  ;;  %v269_v20 = vld [vmem:[%s861_s3 + $0x30] sm:$0xff] }
  0xb0   :  { %v427_v10 = vadd.f32 %v419_v57, %v393_v21  ;;  %v209_v55 = vadd.f32 %v201_v11, %v742_v40  ;;  %v210_v58 = vadd.f32 %v202_v24, %v744_v7  ;;  %v425_v47 = vadd.f32 %v417_v25, %v750_v23  ;;  %v270_v11 = vld [vmem:[%s861_s3 + $0x38] sm:$0xff]  ;;  %v524_v24 = vld [vmem:[%s861_s3 + $0x70] sm:$0xff] }
  0xb1   :  { %v281_v42 = vmax.f32 %v273_v36, 0.0  ;;  %v282_v50 = vmax.f32 %v274_v37, 0.0  ;;  %v482_v22 = vmax.f32 %v474_v39, 0.0  ;;  %v483_v51 = vmax.f32 %v475_v56, 0.0  ;;  %v215_v45 = vpop.permute.xlu1 %214 }
  0xb2   :  { %v247_v46 = vmul.f32 %v688_v16, %v215_v45  ;;  %v248_v8 = vmul.f32 %v690_v17, %v215_v45  ;;  %v447_v12 = vmul.f32 %v692_v18, %v215_v45  ;;  %v448_v13 = vmul.f32 %v694_v19, %v215_v45 }
  0xb3   :  { %289 = vst [vmem:[#allocation2 + $0x10] sm:$0xff] %v281_v42  ;;  %290 = vst [vmem:[#allocation2 + $0x18] sm:$0xff] %v282_v50  ;;  %v426_v48 = vadd.f32 %v418_v38, %v752_v44 }
  0xb4   :  { %491 = vst [vmem:[#allocation2 + $0x50] sm:$0xff] %v482_v22  ;;  %492 = vst [vmem:[#allocation2 + $0x58] sm:$0xff] %v483_v51  ;;  %v255_v27 = vadd.f32 %v247_v46, %v756_v29  ;;  %v256_v31 = vadd.f32 %v248_v8, %v758_v41  ;;  %v455_v54 = vadd.f32 %v447_v12, %v421_v61  ;;  %v267_v29 = vld [vmem:[%s861_s3 + $0x20] sm:$0xff]  ;;  %v268_v41 = vld [vmem:[%s861_s3 + $0x28] sm:$0xff] }
  0xb5   :  { %v456_v35 = vadd.f32 %v448_v13, %v422_v62  ;;  %v223_v59 = vpop.permute.xlu1 %222 }
  0xb6   :  { %v271_v28 = vadd.f32 %v263_v6, %v255_v27  ;;  %v272_v60 = vadd.f32 %v264_v14, %v256_v31  ;;  %v472_v52 = vadd.f32 %v518_v15, %v455_v54  ;;  %v251_v40 = vmul.f32 %v688_v16, %v223_v59 }
  0xb7   :  { %v473_v32 = vadd.f32 %v519_v49, %v456_v35  ;;  %v252_v7 = vmul.f32 %v690_v17, %v223_v59  ;;  %v451_v23 = vmul.f32 %v692_v18, %v223_v59  ;;  %v452_v44 = vmul.f32 %v694_v19, %v223_v59 }
  0xb8   :  { %v279_v61 = vmax.f32 %v271_v28, 0.0  ;;  %v280_v62 = vmax.f32 %v272_v60, 0.0  ;;  %v480_v43 = vmax.f32 %v472_v52, 0.0  ;;  %v259_v1 = vadd.f32 %v251_v40, %v209_v55 }
  0xb9   :  { %v481_v63 = vmax.f32 %v473_v32, 0.0  ;;  %v260_v2 = vadd.f32 %v252_v7, %v210_v58  ;;  %v459_v3 = vadd.f32 %v451_v23, %v425_v47  ;;  %v460_v4 = vadd.f32 %v452_v44, %v426_v48  ;;  %v227_v5 = vpop.permute.xlu1 %226 }
  0xba   :  { %287 = vst [vmem:[#allocation2] sm:$0xff] %v279_v61  ;;  %288 = vst [vmem:[#allocation2 + $0x8] sm:$0xff] %v280_v62  ;;  %v253_v21 = vmul.f32 %v688_v16, %v227_v5  ;;  %v254_v30 = vmul.f32 %v690_v17, %v227_v5  ;;  %v453_v57 = vmul.f32 %v692_v18, %v227_v5  ;;  %v525_v16 = vld [vmem:[%s861_s3 + $0x78] sm:$0xff]  ;;  %s543_s3 = scalar_lea.vmem %s503_s29, 2048 }
  0xbb   :  { %489 = vst [vmem:[#allocation2 + $0x40] sm:$0xff] %v480_v43  ;;  %490 = vst [vmem:[#allocation2 + $0x48] sm:$0xff] %v481_v63  ;;  %v454_v33 = vmul.f32 %v694_v19, %v227_v5  ;;  %v275_v36 = vadd.f32 %v267_v29, %v259_v1  ;;  %v276_v37 = vadd.f32 %v268_v41, %v260_v2  ;;  %p544_p0 = scmp.ne.s32.totalorder %s503_s29, %s543_s3  ;;  %p549_p2 = scmp.lt.s32.totalorder %s543_s3, %s543_s3 }
  0xbc   :  { %v476_v39 = vadd.f32 %v522_v34, %v459_v3  ;;  %v477_v56 = vadd.f32 %v523_v0, %v460_v4  ;;  %v261_v17 = vadd.f32 %v253_v21, %v211_v53  ;;  %v262_v18 = vadd.f32 %v254_v30, %v212_v9 }
  0xbd   :  { %v461_v25 = vadd.f32 %v453_v57, %v427_v10  ;;  %v462_v19 = vadd.f32 %v454_v33, %v428_v26  ;;  %v283_v38 = vmax.f32 %v275_v36, 0.0  ;;  %v284_v42 = vmax.f32 %v276_v37, 0.0  ;;  %p550_p3 = por %p549_p2, %p548_p1 }
  0xbe   :  { %v484_v50 = vmax.f32 %v476_v39, 0.0  ;;  %v485_v22 = vmax.f32 %v477_v56, 0.0  ;;  %v277_v51 = vadd.f32 %v269_v20, %v261_v17  ;;  %v278_v45 = vadd.f32 %v270_v11, %v262_v18 }
  0xbf   :  { %v478_v6 = vadd.f32 %v524_v24, %v461_v25  ;;  %v479_v46 = vadd.f32 %v525_v16, %v462_v19  ;;  %291 = vst [vmem:[#allocation2 + $0x20] sm:$0xff] %v283_v38  ;;  %292 = vst [vmem:[#allocation2 + $0x28] sm:$0xff] %v284_v42  ;;  %p551_p4 = pnand %p550_p3, %p544_p0 }
  0xc0   :  { %493 = vst [vmem:[#allocation2 + $0x60] sm:$0xff] %v484_v50  ;;  %494 = vst [vmem:[#allocation2 + $0x68] sm:$0xff] %v485_v22  ;;  %v285_v8 = vmax.f32 %v277_v51, 0.0  ;;  %v286_v12 = vmax.f32 %v278_v45, 0.0 }
  0xc1   :  { %v486_v13 = vmax.f32 %v478_v6, 0.0  ;;  %v487_v14 = vmax.f32 %v479_v46, 0.0 }
  0xc2   :  { %293 = vst [vmem:[#allocation2 + $0x30] sm:$0xff] %v285_v8  ;;  %294 = vst [vmem:[#allocation2 + $0x38] sm:$0xff] %v286_v12 }
  0xc3   :  { %495 = vst [vmem:[#allocation2 + $0x70] sm:$0xff] %v486_v13  ;;  %496 = vst [vmem:[#allocation2 + $0x78] sm:$0xff] %v487_v14 }
  0xc4   :  { %554 = shalt.err (!%p551_p4)
}
  0xc5   :  { %s555_s7 = scalar_lea.hbm %s863_s5, 2048 }
  0xc6   :  { %p556_p5 = scmp.ne.s32.totalorder %s863_s5, %s555_s7  ;;  %p559_p6 = scmp.lt.u32.totalorder %s555_s7, %s863_s5 }
  0xc8   :  { %p561_p7 = pnand %p559_p6, %p556_p5 }
  0xca   :  { %564 = shalt.err (!%p561_p7)
}
  0xcb   :  { %s572_s12 = smov 256   ;;  %s573_s13 = smov 16  }
  0xcc   :  { %508 = dma.vmem_to_hbm [thread:$0]  %s503_s29, 2048, %s863_s5, [#allocation3], %s572_s12, %s572_s12, %s573_s13  }
  0xcd   :  { %565 = dma.done.wait [#allocation3], 2048  }
  0xce   :  { %566 = vsyncadd [#allocation3], 4294965248 }
  0xcf   :  { %512 = vsyncpa [#allocation3], 1 }

</bundles_post_ra>
